<compile_context>
chip_gen: v7x
topology: tpu7x:2x2x1
jax: 0.10.0
libtpu: 0.0.40
codegen_flags: <defaults>
</compile_context>

<pallas_src>
import jax
import jax.numpy as jnp
from jax.experimental import pallas as pl
from jax.experimental.pallas import tpu as pltpu


# ---------------------------------------------------------------------------
# Fused Pallas kernel (B images per grid step, packed (rows=H, lanes=W*C) layout)
# ---------------------------------------------------------------------------

def make_fused_kernel(B, H, W, c1, c_hid, c2, k):
    pad = k // 2
    WC1, WCh, WC2 = W * c1, W * c_hid, W * c2

    def kernel(x_ref, wcomb_ref, b1_ref, bs_ref, w2_ref, b2_ref, g_ref, o_ref):
        # x_ref: (B, H, W*c1) bf16 -- B images, NHWC with W folded into the lane dim.
        x = x_ref[...].reshape(B * H, WC1)                                 # bf16

        # --- fused 1x1 convs: [shortcut | conv1] in ONE MXU matmul on x ---
        xc = jnp.dot(x, wcomb_ref[...], preferred_element_type=jnp.float32)  # (B*H, WC2+WCh)
        sc = xc[:, :WC2] + bs_ref[...]                                     # shortcut + BN (f32)
        h1 = jnp.maximum(xc[:, WC2:] + b1_ref[...], 0.0)                   # conv1 + BN + ReLU
        h1 = h1.reshape(B, H, WCh)                                         # f32

        # --- kxk conv as k row-shifted matmuls against block-BANDED packed weights ---
        # horizontal taps live inside the banded weight; vertical taps are per-image
        # zero-padded row shifts built as values (no VMEM scratch round trip).
        zrow = jnp.zeros((B, pad, WCh), jnp.float32)
        acc = jnp.zeros((B * H, WC2), jnp.float32)
        for dy in range(k):
            off = dy - pad
            if off == 0:
                win = h1
            elif off > 0:
                win = jnp.concatenate([h1[:, off:, :], zrow[:, :off, :]], axis=1)
            else:
                win = jnp.concatenate([zrow[:, :(-off), :], h1[:, :H + off, :]], axis=1)
            acc = acc + jnp.dot(win.reshape(B * H, WCh).astype(jnp.bfloat16),
                                w2_ref[dy], preferred_element_type=jnp.float32)
        main = jnp.maximum(acc + b2_ref[...], 0.0)                         # conv2 + BN + ReLU

        # --- ScaledResidual: shortcut + gamma * branch (gamma applied AFTER ReLU) ---
        g = g_ref[0]
        out = sc + g * main
        o_ref[...] = out.reshape(B, H, WC2).astype(o_ref.dtype)            # lane-dense bf16

    return kernel


def fused_block(x_packed, wcomb, b1p, bsp, w2p, b2p, gamma, *, H, W, c1, c_hid, c2, k):
    n = x_packed.shape[0]
    WC1, WCh, WC2 = W * c1, W * c_hid, W * c2

    # Per-step image batch B: target >= 128 matmul rows (fills the MXU, amortizes the
    # ~0.35us per-grid-step overhead); must divide n.  With larger n the grid length
    # stays >= 2 (and even) so the 'parallel' axis can split across both v7x TCs.
    target = max(1, 128 // H)
    B = max(d for d in range(1, n + 1) if n % d == 0 and d <= target)
    grid = (n // B,)

    # True conv FLOPs (kron zero-blocks not counted).
    flops = 2 * n * H * W * (c1 * c_hid + k * k * c_hid * c2 + c1 * c2)
    bytes_accessed = int(x_packed.size * 2 + n * H * WC2 * 2        # bf16 in/out
                         + (wcomb.size + w2p.size) * 2              # bf16 weights
                         + (b1p.size + b2p.size + bsp.size + gamma.size) * 4)

    return pl.pallas_call(
        make_fused_kernel(B, H, W, c1, c_hid, c2, k),
        out_shape=jax.ShapeDtypeStruct((n, H, WC2), jnp.bfloat16),
        grid=grid,
        in_specs=[
            pl.BlockSpec((B, H, WC1), lambda i: (i, 0, 0)),        # x (B images per step)
            pl.BlockSpec((WC1, WC2 + WCh), lambda i: (0, 0)),      # fused [shortcut|conv1] weight
            pl.BlockSpec((1, WCh), lambda i: (0, 0)),              # conv1 bias (folded BN)
            pl.BlockSpec((1, WC2), lambda i: (0, 0)),              # shortcut bias (folded BN)
            pl.BlockSpec((k, WCh, WC2), lambda i: (0, 0, 0)),      # conv2 banded tap weights
            pl.BlockSpec((1, WC2), lambda i: (0, 0)),              # conv2 bias (folded BN)
            pl.BlockSpec(memory_space=pltpu.MemorySpace.SMEM),     # gamma scalar
        ],
        out_specs=pl.BlockSpec((B, H, WC2), lambda i: (i, 0, 0)),
        compiler_params=pltpu.CompilerParams(dimension_semantics=("parallel",)),
        cost_estimate=pl.CostEstimate(flops=flops, transcendentals=0,
                                      bytes_accessed=bytes_accessed),
    )(x_packed, wcomb, b1p, bsp, w2p, b2p, gamma)


# ---------------------------------------------------------------------------
# Glue: BN folding, packed (block-diagonal / block-banded) weights, init, forward
# ---------------------------------------------------------------------------

def fold_bn(w, g, beta, mean, var, eps=1e-5):
    """Fold inference-mode BatchNorm into a conv weight whose LAST axis is Cout."""
    s = g / jnp.sqrt(var + eps)
    return w * s, beta - mean * s


def prepare_mats(params):
    """Folded-BN per-channel matmul weights, float32 (gamma NOT folded -- applied post-ReLU)."""
    w1 = jnp.transpose(params["w1"][:, :, 0, 0], (1, 0))           # (c1, c_hid)
    ws = jnp.transpose(params["ws"][:, :, 0, 0], (1, 0))           # (c1, c2)
    w2 = jnp.transpose(params["w2"], (2, 3, 1, 0))                 # (k, k, c_hid, c2)
    w1f, b1f = fold_bn(w1, *params["bn1"])
    w2f, b2f = fold_bn(w2, *params["bn2"])
    wsf, bsf = fold_bn(ws, *params["bns"])
    return w1f, b1f, w2f, b2f, wsf, bsf


def pack_mats(mats, W, k):
    """bf16 packed weights for the (rows=H, lanes=W*C) layout + lane-tiled f32 biases."""
    w1f, b1f, w2f, b2f, wsf, bsf = mats
    pad = k // 2
    eye = jnp.eye(W, dtype=jnp.float32)

    # Fused [shortcut | conv1] 1x1 weight: shortcut output in lanes [0, W*c2) (vreg boundary).
    wsp = jnp.kron(eye, wsf)                                       # (W*c1, W*c2)
    w1p = jnp.kron(eye, w1f)                                       # (W*c1, W*c_hid)
    wcomb = jnp.concatenate([wsp, w1p], axis=1).astype(jnp.bfloat16)

    # Block-BANDED conv2 weight per dy: horizontal taps dx become off-diagonal blocks,
    # W_band[dy][xs*c_hid:.., wx*c2:..] = w2f[dy, dx] with xs = wx + dx - pad.
    w2p = jnp.stack([
        sum(jnp.kron(jnp.eye(W, k=pad - dx, dtype=jnp.float32), w2f[dy, dx])
            for dx in range(k))
        for dy in range(k)]).astype(jnp.bfloat16)                  # (k, W*c_hid, W*c2)

    b1p = jnp.tile(b1f, W)[None, :]                                # (1, W*c_hid) f32
    b2p = jnp.tile(b2f, W)[None, :]                                # (1, W*c2)    f32
    bsp = jnp.tile(bsf, W)[None, :]                                # (1, W*c2)    f32
    return wcomb, b1p, w2p, b2p, bsp


def init_params(key, c1, c2, k):
    c_hid = c2 // 2
    ks = jax.random.split(key, 12)

    def bn(kk, c):
        g = 1.0 + 0.1 * jax.random.normal(kk[0], (c,), jnp.float32)
        b = 0.05 * jax.random.normal(kk[1], (c,), jnp.float32)
        m = 0.05 * jax.random.normal(kk[2], (c,), jnp.float32)
        v = 1.0 + 0.1 * jax.random.uniform(kk[3], (c,), jnp.float32)
        return g, b, m, v

    params = {
        "w1": jax.random.normal(ks[0], (c_hid, c1, 1, 1), jnp.float32) / jnp.sqrt(c1),
        "bn1": bn(jax.random.split(ks[1], 4), c_hid),
        "w2": jax.random.normal(ks[2], (c2, c_hid, k, k), jnp.float32) / jnp.sqrt(c_hid * k * k),
        "bn2": bn(jax.random.split(ks[3], 4), c2),
        "ws": jax.random.normal(ks[4], (c2, c1, 1, 1), jnp.float32) / jnp.sqrt(c1),
        "bns": bn(jax.random.split(ks[5], 4), c2),
        "gamma": jnp.ones((1,), jnp.float32),
    }
    return params, c_hid


def light_resnet_block_forward(x_nchw, params, k):
    n, c1, h, w = x_nchw.shape
    mats = prepare_mats(params)
    c_hid, c2 = mats[0].shape[1], mats[4].shape[1]
    wcomb, b1p, w2p, b2p, bsp = pack_mats(mats, w, k)
    gamma = params["gamma"].astype(jnp.float32)                    # (1,) scalar, SMEM

    # NCHW -> packed (N, H, W*C1), bf16 activations for the MXU.
    x_packed = jnp.transpose(x_nchw, (0, 2, 3, 1)).reshape(n, h, w * c1).astype(jnp.bfloat16)

    out_packed = fused_block(x_packed, wcomb, b1p, bsp, w2p, b2p, gamma,
                             H=h, W=w, c1=c1, c_hid=c_hid, c2=c2, k=k)  # (N, H, W*c2) bf16

    out = out_packed.reshape(n, h, w, c2).astype(jnp.float32)
    return jnp.transpose(out, (0, 3, 1, 2))                        # back to NCHW


# ---------------------------------------------------------------------------
# Pure-JAX reference (same folded weights + same bf16-matmul precision policy)
# ---------------------------------------------------------------------------

def im2col_nhwc(x_nhwc, k):
    n, h, w, c = x_nhwc.shape
    p = k // 2
    xp = jnp.pad(x_nhwc, ((0, 0), (p, p), (p, p), (0, 0)))
    cols = []
    for dy in range(k):
        for dx in range(k):
            cols.append(xp[:, dy:dy + h, dx:dx + w, :])
    return jnp.concatenate(cols, axis=-1).reshape(n * h * w, k * k * c)


def reference_forward(x_nchw, params, k):
    n, c1, h, w = x_nchw.shape
    w1f, b1f, w2f, b2f, wsf, bsf = prepare_mats(params)
    g = params["gamma"][0]
    c_hid = w1f.shape[1]
    x_flat = jnp.transpose(x_nchw, (0, 2, 3, 1)).reshape(n * h * w, c1).astype(jnp.bfloat16)
    h1 = jnp.maximum(jnp.dot(x_flat, w1f.astype(jnp.bfloat16),
                             preferred_element_type=jnp.float32) + b1f[None, :], 0.0)
    patches = im2col_nhwc(h1.astype(jnp.bfloat16).reshape(n, h, w, c_hid), k)
    w2m = w2f.reshape(k * k * c_hid, -1)
    main = jnp.maximum(jnp.dot(patches, w2m.astype(jnp.bfloat16),
                               preferred_element_type=jnp.float32) + b2f[None, :], 0.0)
    sc = jnp.dot(x_flat, wsf.astype(jnp.bfloat16),
                 preferred_element_type=jnp.float32) + bsf[None, :]
    out = sc + g * main
    return jnp.transpose(out.reshape(n, h, w, -1), (0, 3, 1, 2))


if __name__ == "__main__":
    key = jax.random.PRNGKey(0)
    k_x, k_p = jax.random.split(key)

    N, C1, H, W = 2, 4, 16, 16
    C2, K = 8, 3

    x = jax.random.normal(k_x, (N, C1, H, W), jnp.float32)
    params, _ = init_params(k_p, C1, C2, K)

    out = light_resnet_block_forward(x, params, K)
    out = jax.block_until_ready(out)

    ref = reference_forward(x, params, K)
    assert out.shape == (N, C2, H, W), out.shape
    # Kernel emits bf16 (halved HBM writeback); allow for the final-cast rounding.
    assert jnp.allclose(out, ref, atol=2e-2, rtol=2e-2), "mismatch vs JAX reference"

    print("KERNEL_OK")
</pallas_src>

<mosaic_0001>
module attributes {stable_mosaic.version = 11 : i64} {
  func.func @kernel(%arg0: i32, %arg1: memref<2x16x64xbf16, #tpu.memory_space<vmem>>, %arg2: memref<64x192xbf16, #tpu.memory_space<vmem>>, %arg3: memref<1x64xf32, #tpu.memory_space<vmem>>, %arg4: memref<1x128xf32, #tpu.memory_space<vmem>>, %arg5: memref<3x64x128xbf16, #tpu.memory_space<vmem>>, %arg6: memref<1x128xf32, #tpu.memory_space<vmem>>, %arg7: memref<1xf32, #tpu.memory_space<smem>>, %arg8: memref<2x16x128xbf16, #tpu.memory_space<vmem>>) attributes {dimension_semantics = [#tpu.dimension_semantics<parallel>], iteration_bounds = array<i64: 1>, scalar_prefetch = 0 : i64, scratch_operands = 0 : i64, tpu.core_type = #tpu.core_type<tc>, window_params = [{transform_indices = @transform_0, window_bounds = array<i64: 2, 16, 64>}, {pipeline_mode = #tpu.pipeline_mode<synchronous>, transform_indices = @transform_1, window_bounds = array<i64: 64, 192>}, {pipeline_mode = #tpu.pipeline_mode<synchronous>, transform_indices = @transform_2, window_bounds = array<i64: 1, 64>}, {pipeline_mode = #tpu.pipeline_mode<synchronous>, transform_indices = @transform_3, window_bounds = array<i64: 1, 128>}, {pipeline_mode = #tpu.pipeline_mode<synchronous>, transform_indices = @transform_4, window_bounds = array<i64: 3, 64, 128>}, {pipeline_mode = #tpu.pipeline_mode<synchronous>, transform_indices = @transform_5, window_bounds = array<i64: 1, 128>}, {transform_indices = @transform_6, window_bounds = array<i64: 1>}, {transform_indices = @transform_7, window_bounds = array<i64: 2, 16, 128>}]} {
    %c0 = arith.constant 0 : index
    %c0_0 = arith.constant 0 : index
    %c0_1 = arith.constant 0 : index
    %0 = vector.load %arg1[%c0, %c0_0, %c0_1] : memref<2x16x64xbf16, #tpu.memory_space<vmem>>, vector<2x16x64xbf16>
    %1 = vector.shape_cast %0 : vector<2x16x64xbf16> to vector<32x64xbf16>
    %c0_2 = arith.constant 0 : index
    %c0_3 = arith.constant 0 : index
    %2 = vector.load %arg2[%c0_2, %c0_3] : memref<64x192xbf16, #tpu.memory_space<vmem>>, vector<64x192xbf16>
    %cst = arith.constant dense<0.000000e+00> : vector<32x192xf32>
    %3 = tpu.matmul %1, %2, %cst {dimension_numbers = #tpu.dot_dimension_numbers<[1], [0], [0], [1], [0, 0, 1, 1], [], []>} : vector<32x64xbf16>, vector<64x192xbf16>, vector<32x192xf32> -> vector<32x192xf32>
    %4 = vector.extract_strided_slice %3 {offsets = [0, 0], sizes = [32, 128], strides = [1, 1]} : vector<32x192xf32> to vector<32x128xf32>
    %c0_4 = arith.constant 0 : index
    %c0_5 = arith.constant 0 : index
    %5 = vector.load %arg4[%c0_4, %c0_5] : memref<1x128xf32, #tpu.memory_space<vmem>>, vector<1x128xf32>
    %6 = vector.broadcast %5 : vector<1x128xf32> to vector<32x128xf32>
    %7 = arith.addf %4, %6 : vector<32x128xf32>
    %8 = vector.extract_strided_slice %3 {offsets = [0, 128], sizes = [32, 64], strides = [1, 1]} : vector<32x192xf32> to vector<32x64xf32>
    %c0_6 = arith.constant 0 : index
    %c0_7 = arith.constant 0 : index
    %9 = vector.load %arg3[%c0_6, %c0_7] : memref<1x64xf32, #tpu.memory_space<vmem>>, vector<1x64xf32>
    %10 = vector.broadcast %9 : vector<1x64xf32> to vector<32x64xf32>
    %11 = arith.addf %8, %10 : vector<32x64xf32>
    %cst_8 = arith.constant 0.000000e+00 : f32
    %12 = vector.broadcast %cst_8 : f32 to vector<32x64xf32>
    %13 = arith.maximumf %11, %12 : vector<32x64xf32>
    %14 = vector.shape_cast %13 : vector<32x64xf32> to vector<2x16x64xf32>
    %cst_9 = arith.constant 0.000000e+00 : f32
    %15 = vector.broadcast %cst_9 : f32 to vector<2x1x64xf32>
    %cst_10 = arith.constant 0.000000e+00 : f32
    %16 = vector.broadcast %cst_10 : f32 to vector<32x128xf32>
    %17 = vector.extract_strided_slice %14 {offsets = [0, 0, 0], sizes = [2, 15, 64], strides = [1, 1, 1]} : vector<2x16x64xf32> to vector<2x15x64xf32>
    %18 = tpu.concatenate %15, %17 in 1 : vector<2x1x64xf32>, vector<2x15x64xf32> -> vector<2x16x64xf32>
    %19 = vector.shape_cast %18 : vector<2x16x64xf32> to vector<32x64xf32>
    %20 = arith.truncf %19 : vector<32x64xf32> to vector<32x64xbf16>
    %c0_11 = arith.constant 0 : index
    %c0_12 = arith.constant 0 : index
    %c0_13 = arith.constant 0 : index
    %21 = vector.load %arg5[%c0_11, %c0_12, %c0_13] : memref<3x64x128xbf16, #tpu.memory_space<vmem>>, vector<1x64x128xbf16>
    %22 = vector.shape_cast %21 : vector<1x64x128xbf16> to vector<64x128xbf16>
    %cst_14 = arith.constant dense<0.000000e+00> : vector<32x128xf32>
    %23 = tpu.matmul %20, %22, %cst_14 {dimension_numbers = #tpu.dot_dimension_numbers<[1], [0], [0], [1], [0, 0, 1, 1], [], []>} : vector<32x64xbf16>, vector<64x128xbf16>, vector<32x128xf32> -> vector<32x128xf32>
    %24 = arith.addf %16, %23 : vector<32x128xf32>
    %25 = vector.shape_cast %14 : vector<2x16x64xf32> to vector<32x64xf32>
    %26 = arith.truncf %25 : vector<32x64xf32> to vector<32x64xbf16>
    %c1 = arith.constant 1 : index
    %c0_15 = arith.constant 0 : index
    %c0_16 = arith.constant 0 : index
    %27 = vector.load %arg5[%c1, %c0_15, %c0_16] : memref<3x64x128xbf16, #tpu.memory_space<vmem>>, vector<1x64x128xbf16>
    %28 = vector.shape_cast %27 : vector<1x64x128xbf16> to vector<64x128xbf16>
    %cst_17 = arith.constant dense<0.000000e+00> : vector<32x128xf32>
    %29 = tpu.matmul %26, %28, %cst_17 {dimension_numbers = #tpu.dot_dimension_numbers<[1], [0], [0], [1], [0, 0, 1, 1], [], []>} : vector<32x64xbf16>, vector<64x128xbf16>, vector<32x128xf32> -> vector<32x128xf32>
    %30 = arith.addf %24, %29 : vector<32x128xf32>
    %31 = vector.extract_strided_slice %14 {offsets = [0, 1, 0], sizes = [2, 15, 64], strides = [1, 1, 1]} : vector<2x16x64xf32> to vector<2x15x64xf32>
    %32 = tpu.concatenate %31, %15 in 1 : vector<2x15x64xf32>, vector<2x1x64xf32> -> vector<2x16x64xf32>
    %33 = vector.shape_cast %32 : vector<2x16x64xf32> to vector<32x64xf32>
    %34 = arith.truncf %33 : vector<32x64xf32> to vector<32x64xbf16>
    %c2 = arith.constant 2 : index
    %c0_18 = arith.constant 0 : index
    %c0_19 = arith.constant 0 : index
    %35 = vector.load %arg5[%c2, %c0_18, %c0_19] : memref<3x64x128xbf16, #tpu.memory_space<vmem>>, vector<1x64x128xbf16>
    %36 = vector.shape_cast %35 : vector<1x64x128xbf16> to vector<64x128xbf16>
    %cst_20 = arith.constant dense<0.000000e+00> : vector<32x128xf32>
    %37 = tpu.matmul %34, %36, %cst_20 {dimension_numbers = #tpu.dot_dimension_numbers<[1], [0], [0], [1], [0, 0, 1, 1], [], []>} : vector<32x64xbf16>, vector<64x128xbf16>, vector<32x128xf32> -> vector<32x128xf32>
    %38 = arith.addf %30, %37 : vector<32x128xf32>
    %c0_21 = arith.constant 0 : index
    %c0_22 = arith.constant 0 : index
    %39 = vector.load %arg6[%c0_21, %c0_22] : memref<1x128xf32, #tpu.memory_space<vmem>>, vector<1x128xf32>
    %40 = vector.broadcast %39 : vector<1x128xf32> to vector<32x128xf32>
    %41 = arith.addf %38, %40 : vector<32x128xf32>
    %cst_23 = arith.constant 0.000000e+00 : f32
    %42 = vector.broadcast %cst_23 : f32 to vector<32x128xf32>
    %43 = arith.maximumf %41, %42 : vector<32x128xf32>
    %c0_24 = arith.constant 0 : index
    %44 = memref.load %arg7[%c0_24] : memref<1xf32, #tpu.memory_space<smem>>
    %45 = vector.broadcast %44 : f32 to vector<32x128xf32>
    %46 = arith.mulf %45, %43 : vector<32x128xf32>
    %47 = arith.addf %7, %46 : vector<32x128xf32>
    %48 = vector.shape_cast %47 : vector<32x128xf32> to vector<2x16x128xf32>
    %49 = arith.truncf %48 : vector<2x16x128xf32> to vector<2x16x128xbf16>
    %c0_25 = arith.constant 0 : index
    %c0_26 = arith.constant 0 : index
    %c0_27 = arith.constant 0 : index
    %50 = vector.load %arg8[%c0_25, %c0_26, %c0_27] : memref<2x16x128xbf16, #tpu.memory_space<vmem>>, vector<2x16x128xbf16>
    tpu.vector_store %arg8[%c0_25, %c0_26, %c0_27], %49 {strides = array<i32>} : memref<2x16x128xbf16, #tpu.memory_space<vmem>>, vector<2x16x128xbf16>,
    return
  }
  func.func @transform_0(%arg0: i32) -> (i32, i32, i32) {
    %c0_i32 = arith.constant 0 : i32
    %c0_i32_0 = arith.constant 0 : i32
    %c0_i32_1 = arith.constant 0 : i32
    return %arg0, %c0_i32, %c0_i32_0 : i32, i32, i32
  }
  func.func @transform_1(%arg0: i32) -> (i32, i32) {
    %c0_i32 = arith.constant 0 : i32
    %c0_i32_0 = arith.constant 0 : i32
    %c0_i32_1 = arith.constant 0 : i32
    return %c0_i32, %c0_i32_0 : i32, i32
  }
  func.func @transform_2(%arg0: i32) -> (i32, i32) {
    %c0_i32 = arith.constant 0 : i32
    %c0_i32_0 = arith.constant 0 : i32
    %c0_i32_1 = arith.constant 0 : i32
    return %c0_i32, %c0_i32_0 : i32, i32
  }
  func.func @transform_3(%arg0: i32) -> (i32, i32) {
    %c0_i32 = arith.constant 0 : i32
    %c0_i32_0 = arith.constant 0 : i32
    %c0_i32_1 = arith.constant 0 : i32
    return %c0_i32, %c0_i32_0 : i32, i32
  }
  func.func @transform_4(%arg0: i32) -> (i32, i32, i32) {
    %c0_i32 = arith.constant 0 : i32
    %c0_i32_0 = arith.constant 0 : i32
    %c0_i32_1 = arith.constant 0 : i32
    %c0_i32_2 = arith.constant 0 : i32
    return %c0_i32, %c0_i32_0, %c0_i32_1 : i32, i32, i32
  }
  func.func @transform_5(%arg0: i32) -> (i32, i32) {
    %c0_i32 = arith.constant 0 : i32
    %c0_i32_0 = arith.constant 0 : i32
    %c0_i32_1 = arith.constant 0 : i32
    return %c0_i32, %c0_i32_0 : i32, i32
  }
  func.func @transform_6(%arg0: i32) -> i32 {
    %c0_i32 = arith.constant 0 : i32
    %c0_i32_0 = arith.constant 0 : i32
    return %c0_i32 : i32
  }
  func.func @transform_7(%arg0: i32) -> (i32, i32, i32) {
    %c0_i32 = arith.constant 0 : i32
    %c0_i32_0 = arith.constant 0 : i32
    %c0_i32_1 = arith.constant 0 : i32
    return %arg0, %c0_i32, %c0_i32_0 : i32, i32, i32
  }
}

</mosaic_0001>

<bundles_post_ra>
// kernel: tpu_custom_call.1
= control target key start
LH: loop header
LB: loop body
LE: loop exit
PB: predicated region body
PF: predicated region fallthrough
CT: control target
= control target key end

     0   :  { %13 = vsyncpa [#allocation4], 0  ;;  %s970_s0 = inlined_call_operand.hbm [shape: bf16[2,16,64], index: 0, kind: input, shape index: {}]   ;;  %s971_s1 = inlined_call_operand.hbm [shape: bf16[64,192], index: 1, kind: input, shape index: {}]   ;;  %s972_s2 = inlined_call_operand.vmem [shape: f32[1,64], index: 2, kind: input, shape index: {}]   ;;  %s973_s3 = inlined_call_operand.vmem [shape: f32[1,128], index: 3, kind: input, shape index: {}]   ;;  %s974_s4 = inlined_call_operand.hbm [shape: bf16[3,64,128], index: 4, kind: input, shape index: {}]   ;;  %s975_s5 = inlined_call_operand.vmem [shape: f32[1,128], index: 5, kind: input, shape index: {}]   ;;  %s976_s6 = inlined_call_operand.<no memory space> [shape: f32[1], index: 6, kind: input, shape index: {}]   ;;  %s977_s7 = inlined_call_operand.hbm [shape: bf16[2,16,128], index: 7, kind: output, shape index: {}]  }
   0x1   :  { %14 = vsyncpa [#allocation7], 0 }
   0x2   :  { %15 = vsyncpa [#allocation5], 0  ;;  %s827_s24 = smov [#allocation6]   ;;  %s733_s28 = scalar_lea.hbm %s971_s1, 1024 }
   0x3   :  { %s33_s25 = sshll.u32 %s827_s24, 4  ;;  %p734_p0 = scmp.ne.s32.totalorder %s971_s1, %s733_s28  ;;  %s34_s25 = int_to_ptr.vmem [resolvable:$true] %s33_s25 }
   0x4   :  { %p737_p1 = scmp.lt.u32.totalorder %s733_s28, %s971_s1 }
   0x6   :  { %p739_p2 = pnand %p737_p1, %p734_p0 }
   0x8   :  { %742 = shalt.err (!%p739_p2)
}
   0x9   :  { %s743_s10 = scalar_lea.vmem %s34_s25, 1024  ;;  %p748_p4 = scmp.lt.s32.totalorder %s34_s25, %s34_s25 }
   0xa   :  { %p744_p3 = scmp.ne.s32.totalorder %s34_s25, %s743_s10  ;;  %p749_p5 = scmp.lt.s32.totalorder %s743_s10, %s743_s10 }
   0xc   :  { %p750_p6 = por %p749_p5, %p748_p4 }
   0xe   :  { %p751_p7 = pnand %p750_p6, %p744_p3 }
  0x10   :  { %754 = shalt.err (!%p751_p7)
}
  0x11   :  { %s828_s11 = smov 128   ;;  %s829_s12 = smov 8  }
  0x12   :  { %39 = dma.hbm_to_vmem [thread:$0]  %s971_s1, 1024, %s34_s25, [#allocation7], %s828_s11, %s828_s11, %s829_s12  }
  0x13   :  { %s830_s15 = smov [#allocation3]   ;;  %s755_s19 = scalar_lea.hbm %s970_s0, 256 }
  0x14   :  { %s21_s16 = sshll.u32 %s830_s15, 4  ;;  %p756_p8 = scmp.ne.s32.totalorder %s970_s0, %s755_s19  ;;  %s22_s16 = int_to_ptr.vmem [resolvable:$true] %s21_s16 }
  0x15   :  { %p759_p9 = scmp.lt.u32.totalorder %s755_s19, %s970_s0 }
  0x17   :  { %p761_p10 = pnand %p759_p9, %p756_p8 }
  0x19   :  { %764 = shalt.err (!%p761_p10)
}
  0x1a   :  { %s765_s24 = scalar_lea.vmem %s22_s16, 256  ;;  %p770_p12 = scmp.lt.s32.totalorder %s22_s16, %s22_s16 }
  0x1b   :  { %p766_p11 = scmp.ne.s32.totalorder %s22_s16, %s765_s24  ;;  %p771_p13 = scmp.lt.s32.totalorder %s765_s24, %s765_s24 }
  0x1d   :  { %p772_p0 = por %p771_p13, %p770_p12 }
  0x1f   :  { %p773_p1 = pnand %p772_p0, %p766_p11 }
  0x21   :  { %776 = shalt.err (!%p773_p1)
}
  0x22   :  { %s831_s1 = smov 64   ;;  %s832_s25 = smov 4  }
  0x23   :  { %27 = dma.hbm_to_vmem [thread:$0]  %s970_s0, 256, %s22_s16, [#allocation4], %s831_s1, %s831_s1, %s832_s25  }
  0x24   :  { %s833_s28 = smov [#allocation8]   ;;  %s777_s9 = scalar_lea.hbm %s974_s4, 1536 }
  0x25   :  { %s49_s29 = sshll.u32 %s833_s28, 4  ;;  %p778_p2 = scmp.ne.s32.totalorder %s974_s4, %s777_s9  ;;  %s50_s29 = int_to_ptr.vmem [resolvable:$true] %s49_s29 }
  0x26   :  { %p781_p3 = scmp.lt.u32.totalorder %s777_s9, %s974_s4 }
  0x28   :  { %p783_p4 = pnand %p781_p3, %p778_p2 }
  0x2a   :  { %786 = shalt.err (!%p783_p4)
}
  0x2b   :  { %s787_s14 = scalar_lea.vmem %s50_s29, 1536  ;;  %p792_p6 = scmp.lt.s32.totalorder %s50_s29, %s50_s29 }
  0x2c   :  { %p788_p5 = scmp.ne.s32.totalorder %s50_s29, %s787_s14  ;;  %p793_p7 = scmp.lt.s32.totalorder %s787_s14, %s787_s14 }
  0x2e   :  { %p794_p8 = por %p793_p7, %p792_p6 }
  0x30   :  { %p795_p9 = pnand %p794_p8, %p788_p5 }
  0x32   :  { %798 = shalt.err (!%p795_p9)
}
  0x33   :  { %55 = dma.hbm_to_vmem [thread:$0]  %s974_s4, 1536, %s50_s29, [#allocation7], %s831_s1, %s831_s1, %s832_s25  }
  0x34   :  { %821 = dma.done.wait [#allocation4], 256  }
  0x35   :  { %822 = vsyncadd [#allocation4], 4294967040 }
  0x36   :  { %823 = dma.done.wait [#allocation7], 2560  }
  0x37   :  { %824 = vsyncadd [#allocation7], 4294964736  ;;  %v834_v0 = vmov 0   ;;  %v707_v1 = vld [vmem:[#allocation6 + $0x4] ss:$8 sps:$4 sm:$0xff]   ;;  %v719_v9 = vld [vmem:[#allocation3] sm:$0xff]  }
  0x38   :  { %171 = vmatprep.mubr.bf16.mxu0 %v834_v0  ;;  %v709_v2 = vld [vmem:[#allocation6] ss:$8 sps:$4 sm:$0xff]   ;;  %139 = vmatprep.subr.bf16.mxu0 %v707_v1  ;;  %v710_v3 = vld [vmem:[#allocation6 + $0x14] ss:$8 sps:$4 sm:$0xff]   ;;  %v712_v4 = vld [vmem:[#allocation6 + $0x10] ss:$8 sps:$4 sm:$0xff]  }
  0x39   :  { %140 = vmatpush1.bf16.msra.mxu0 %v709_v2  ;;  %v713_v5 = vld [vmem:[#allocation6 + $0x24] ss:$8 sps:$4 sm:$0xff]   ;;  %v715_v6 = vld [vmem:[#allocation6 + $0x20] ss:$8 sps:$4 sm:$0xff]   ;;  %v716_v7 = vld [vmem:[#allocation6 + $0x34] ss:$8 sps:$4 sm:$0xff]  }
  0x3a   :  { %141 = vmatprep.subr.bf16.mxu0 %v710_v3  ;;  %v718_v8 = vld [vmem:[#allocation6 + $0x30] ss:$8 sps:$4 sm:$0xff]   ;;  %vm132_vm0 = vcmask 523264   ;;  %v721_v11 = vld [vmem:[#allocation8 + $0x20] sm:$0xff]   ;;  %v723_v13 = vld [vmem:[#allocation8 + $0x28] sm:$0xff]   ;;  %vm222_vm1 = vcmask 1040384  }
  0x3b   :  { %v720_v10 = vld [vmem:[#allocation3 + $0x8] sm:$0xff]   ;;  %v722_v12 = vld [vmem:[#allocation8] sm:$0xff]   ;;  %v724_v14 = vld [vmem:[#allocation8 + $0x8] sm:$0xff]   ;;  %vm414_vm2 = vcmask 1046528  }
  0x3c   :  { %666 = vmatprep.subr.bf16.mxu1 %v722_v12  ;;  %v725_v15 = vld [vmem:[#allocation8 + $0x30] sm:$0xff]   ;;  %v727_v17 = vld [vmem:[#allocation8 + $0x38] sm:$0xff]   ;;  %v729_v19 = vld [vmem:[#allocation8 + $0x40] sm:$0xff]  }
  0x3d   :  { %142 = vmatpush1.bf16.msra.mxu0 %v712_v4  ;;  %667 = vmatpush3.bf16.msra.mxu1 %v722_v12  ;;  %v726_v16 = vld [vmem:[#allocation8 + $0x10] sm:$0xff]   ;;  %v728_v18 = vld [vmem:[#allocation8 + $0x18] sm:$0xff]   ;;  %v730_v59 = vld [vmem:[#allocation8 + $0x48] sm:$0xff]  }
  0x3e   :  { %143 = vmatprep.subr.bf16.mxu0 %v713_v5  ;;  %668 = vmatprep.subr.bf16.mxu1 %v724_v14  ;;  %v597_v20 = vld [vmem:[%s972_s2] ss:$0 sm:$0xff]  ;;  %v732_v61 = vld [vmem:[#allocation8 + $0x58] sm:$0xff]  }
  0x3f   :  { %v731_v60 = vld [vmem:[#allocation8 + $0x50] sm:$0xff]  }
  0x40   :  { %v616_v3 = vld [vmem:[%s975_s5] ss:$0 sm:$0xff] }
  0x41   :  { %144 = vmatpush1.bf16.msra.mxu0 %v715_v6  ;;  %669 = vmatpush3.bf16.msra.mxu1 %v724_v14  ;;  %v596_v14 = vld [vmem:[%s973_s3] ss:$0 sm:$0xff]  ;;  %s835_s3 = smov [#allocation9]  }
  0x42   :  { %145 = vmatprep.subr.bf16.mxu0 %v716_v7  ;;  %670 = vmatprep.subr.bf16.mxu1 %v726_v16  ;;  %s571_s5 = sshll.u32 %s835_s3, 4  ;;  %s572_s5 = int_to_ptr.vmem [resolvable:$true] %s571_s5 }
  0x43   :  { %p804_p11 = scmp.lt.s32.totalorder %s572_s5, %s572_s5 }
  0x45   :  { %146 = vmatpush1.bf16.msra.mxu0 %v718_v8  ;;  %671 = vmatpush3.bf16.msra.mxu1 %v726_v16 }
  0x46   :  { %654 = vmatprep.subr.bf16.mxu0 %v721_v11  ;;  %672 = vmatprep.subr.bf16.mxu1 %v728_v18 }
  0x48   :  { %594 = vmatmul.mubr.msk.bf16.vlgmr.msra.gmra.mrb[0].mxu0 %vm132_vm0, %v719_v9 }
  0x49   :  { %181 = vmatprep.mubr.bf16.mxu0 %v834_v0  ;;  %655 = vmatpush3.bf16.msra.mxu0 %v721_v11  ;;  %v537_v11 = vstv %s976_s6  ;;  %s799_s6 = scalar_lea.vmem %s572_s5, 256 }
  0x4a   :  { %656 = vmatprep.subr.bf16.mxu0 %v723_v13  ;;  %673 = vmatpush3.bf16.msra.mxu1 %v728_v18  ;;  %p800_p10 = scmp.ne.s32.totalorder %s572_s5, %s799_s6  ;;  %p805_p12 = scmp.lt.s32.totalorder %s799_s6, %s799_s6 }
  0x4b   :  { %678 = vmatprep.subr.bf16.mxu1 %v729_v19 }
  0x4c   :  { %p806_p13 = por %p805_p12, %p804_p11 }
  0x4d   :  { %657 = vmatpush3.bf16.msra.mxu0 %v723_v13 }
  0x4e   :  { %658 = vmatprep.subr.bf16.mxu0 %v725_v15  ;;  %p807_p0 = pnand %p806_p13, %p800_p10 }
  0x50   :  { %595 = vmatmul.mubr.msk.bf16.gmra.mrb[4].mxu0 %vm132_vm0, %v720_v10 }
  0x51   :  { %659 = vmatpush3.bf16.msra.mxu0 %v725_v15 }
  0x52   :  { %660 = vmatprep.subr.bf16.mxu0 %v727_v17 }
  0x55   :  { %661 = vmatpush3.bf16.msra.mxu0 %v727_v17 }
 0x11b   :  { %v923_v21 = vpop.f32.mrb[0].mxu0 }
 0x11c   :  { %v175_v22 = vpop.f32.mrb[1].mxu0 }
 0x11d   :  { %v210_v23 = vadd.f32 %v597_v20, %v175_v22  ;;  %v925_v24 = vpop.f32.mrb[2].mxu0 }
 0x11e   :  { %v179_v25 = vpop.f32.mrb[3].mxu0 }
 0x11f   :  { %v214_v26 = vmax.f32 %v210_v23, 0.0  ;;  %v211_v27 = vadd.f32 %v597_v20, %v179_v25  ;;  %v199_v23 = vadd.f32 %v596_v14, %v923_v21 }
 0x121   :  { %v215_v28 = vmax.f32 %v211_v27, 0.0  ;;  %v223_v29 = vrot.slane %v214_v26, 7  ;;  %v415_v30 = vrot.slane %v214_v26, 1 }
 0x123   :  { %v224_v31 = vrot.slane %v215_v28, 7  ;;  %v245_v32 = vpack.c.bf16 %v215_v28, %v214_v26  ;;  %v416_v33 = vrot.slane %v215_v28, 1  ;;  %v183_v34 = vpop.f32.mrb[4].mxu0  ;;  %v233_v36 = vsel %vm222_vm1, 0.0, %v223_v29 }
 0x124   :  { %v185_v35 = vpop.f32.mrb[5].mxu0 }
 0x125   :  { %v425_v37 = vsel %vm414_vm2, %v416_v33, 0.0  ;;  %v212_v38 = vadd.f32 %v597_v20, %v185_v35  ;;  %v929_v39 = vpop.f32.mrb[6].mxu0  ;;  %662 = vmatprep.mubr.msk.bf16.mxu0 %vm132_vm0, %v245_v32  ;;  %v225_v40 = vsel %vm222_vm1, %v223_v29, %v224_v31  ;;  %v417_v41 = vsel %vm414_vm2, %v415_v30, %v416_v33 }
 0x126   :  { %v189_v42 = vpop.f32.mrb[7].mxu0  ;;  %v235_v43 = vpack.c.bf16 %v225_v40, %v233_v36  ;;  %v427_v44 = vpack.c.bf16 %v425_v37, %v417_v41  ;;  %v202_v27 = vadd.f32 %v596_v14, %v929_v39  ;;  %v200_v30 = vadd.f32 %v596_v14, %v925_v24 }
 0x127   :  { %v216_v45 = vmax.f32 %v212_v38, 0.0  ;;  %v213_v46 = vadd.f32 %v597_v20, %v189_v42 }
 0x128   :  { %674 = vmatprep.mubr.msk.bf16.mxu1 %vm132_vm0, %v235_v43 }
 0x129   :  { %v226_v47 = vrot.slane %v216_v45, 7  ;;  %v217_v48 = vmax.f32 %v213_v46, 0.0  ;;  %v418_v49 = vrot.slane %v216_v45, 1 }
 0x12b   :  { %v227_v50 = vrot.slane %v217_v48, 7  ;;  %v246_v51 = vpack.c.bf16 %v217_v48, %v216_v45  ;;  %v419_v52 = vrot.slane %v217_v48, 1  ;;  %v234_v56 = vsel %vm222_vm1, 0.0, %v226_v47 }
 0x12d   :  { %v420_v53 = vsel %vm414_vm2, %v418_v49, %v419_v52  ;;  %v426_v54 = vsel %vm414_vm2, %v419_v52, 0.0  ;;  %663 = vmatmul.mubr.msk.bf16.vlgmr.msra.gmra.mrb[8].mxu0 %vm132_vm0, %v246_v51  ;;  %v228_v55 = vsel %vm222_vm1, %v226_v47, %v227_v50 }
 0x12e   :  { %v428_v57 = vpack.c.bf16 %v426_v54, %v420_v53  ;;  %v236_v58 = vpack.c.bf16 %v228_v55, %v234_v56 }
 0x130   :  { %675 = vmatmul.mubr.msk.bf16.vlgmr.msra.gmra.mrb[0].mxu1 %vm132_vm0, %v236_v58 }
 0x131   :  { %679 = vmatpush3.bf16.msra.mxu1 %v729_v19  ;;  %686 = vmatprep.mubr.msk.bf16.mxu1 %vm132_vm0, %v427_v44  ;;  %v201_v19 = vadd.f32 %v596_v14, %v183_v34 }
 0x132   :  { %680 = vmatprep.subr.bf16.mxu1 %v730_v59 }
 0x135   :  { %681 = vmatpush3.bf16.msra.mxu1 %v730_v59 }
 0x136   :  { %682 = vmatprep.subr.bf16.mxu1 %v731_v60 }
 0x139   :  { %683 = vmatpush3.bf16.msra.mxu1 %v731_v60 }
 0x13a   :  { %684 = vmatprep.subr.bf16.mxu1 %v732_v61 }
 0x13d   :  { %685 = vmatpush3.bf16.msra.mxu1 %v732_v61 }
 0x140   :  { %687 = vmatmul.mubr.msk.bf16.vlgmr.msra.gmra.mrb[0].mxu1 %vm132_vm0, %v428_v57 }
 0x200   :  { %v664_v62 = vpop.f32.mrb[8].mxu0 }
 0x201   :  { %v320_v63 = vpop.f32.mrb[9].mxu0 }
 0x202   :  { %v665_v0 = vpop.f32.mrb[10].mxu0 }
 0x203   :  { %v323_v1 = vpop.f32.mrb[11].mxu0 }
 0x213   :  { %v688_v2 = vpop.f32.mrb[0].mxu1 }
 0x214   :  { %v690_v4 = vadd.f32 %v688_v2, %v664_v62  ;;  %v502_v5 = vpop.f32.mrb[1].mxu1 }
 0x215   :  { %v691_v6 = vadd.f32 %v502_v5, %v320_v63  ;;  %v689_v7 = vpop.f32.mrb[2].mxu1 }
 0x216   :  { %v530_v8 = vadd.f32 %v690_v4, %v616_v3  ;;  %v692_v9 = vadd.f32 %v689_v7, %v665_v0  ;;  %v505_v10 = vpop.f32.mrb[3].mxu1 }
 0x217   :  { %v528_v12 = vadd.f32 %v691_v6, %v616_v3  ;;  %v693_v13 = vadd.f32 %v505_v10, %v323_v1 }
 0x218   :  { %v534_v15 = vmax.f32 %v530_v8, 0.0  ;;  %v531_v16 = vadd.f32 %v692_v9, %v616_v3 }
 0x219   :  { %v532_v17 = vmax.f32 %v528_v12, 0.0  ;;  %v529_v18 = vadd.f32 %v693_v13, %v616_v3 }
 0x21a   :  { %v540_v20 = vmul.f32 %v537_v11, %v534_v15  ;;  %v535_v22 = vmax.f32 %v531_v16, 0.0 }
 0x21b   :  { %v538_v25 = vmul.f32 %v537_v11, %v532_v17  ;;  %v533_v26 = vmax.f32 %v529_v18, 0.0 }
 0x21c   :  { %v544_v28 = vadd.f32 %v540_v20, %v201_v19  ;;  %v541_v29 = vmul.f32 %v537_v11, %v535_v22 }
 0x21d   :  { %v542_v31 = vadd.f32 %v538_v25, %v199_v23  ;;  %v539_v32 = vmul.f32 %v537_v11, %v533_v26 }
 0x21e   :  { %v545_v33 = vadd.f32 %v541_v29, %v202_v27 }
 0x21f   :  { %v543_v35 = vadd.f32 %v539_v32, %v200_v30 }
 0x220   :  { %v633_v36 = vpack.c.bf16 %v545_v33, %v544_v28 }
 0x221   :  { %v628_v34 = vpack.c.bf16 %v543_v35, %v542_v31 }
 0x222   :  { %635 = vst [vmem:[#allocation9 + $0x8] sm:$0xff] %v633_v36  }
 0x223   :  { %629 = vst [vmem:[#allocation9] sm:$0xff] %v628_v34  }
 0x224   :  { %810 = shalt.err (!%p807_p0)
}
 0x225   :  { %s811_s24 = scalar_lea.hbm %s977_s7, 256 }
 0x226   :  { %p812_p1 = scmp.ne.s32.totalorder %s977_s7, %s811_s24  ;;  %p815_p2 = scmp.lt.u32.totalorder %s811_s24, %s977_s7 }
 0x228   :  { %p817_p3 = pnand %p815_p2, %p812_p1 }
 0x22a   :  { %820 = shalt.err (!%p817_p3)
}
 0x22b   :  { %577 = dma.vmem_to_hbm [thread:$0]  %s572_s5, 256, %s977_s7, [#allocation5], %s831_s1, %s831_s1, %s832_s25  }
 0x22c   :  { %825 = dma.done.wait [#allocation5], 256  }
 0x22d   :  { %826 = vsyncadd [#allocation5], 4294967040 }
 0x22e   :  { %581 = vsyncpa [#allocation4], 1 }
 0x22f   :  { %582 = vsyncpa [#allocation7], 1 }
 0x230   :  { %583 = vsyncpa [#allocation5], 1 }

</bundles_post_ra>
